<compile_context>
chip_gen: v7x
topology: tpu7x:2x2x1
jax: 0.10.0
libtpu: 0.0.40
codegen_flags: <defaults>
</compile_context>

<pallas_src>
import functools

import jax
import jax.numpy as jnp
from jax.experimental import pallas as pl
from jax.experimental.pallas import tpu as pltpu


def _round_up(v, m):
    return ((v + m - 1) // m) * m


def _token_split_kernel(x_ref, wf_ref, ws_ref, bf_ref, bs_ref, fg_ref, sc_ref):
    """x_ref: (TM, Cp) activations; wf/ws: (Cp, Cp) weight halves (compute dtype);
    bf/bs: (1, Cp) f32 bias halves; fg/sc: (TM, Cp) outputs."""
    x = x_ref[...].astype(wf_ref.dtype)  # bf16 MXU operands (cast on VPU, no HBM pass)
    zf = jnp.dot(x, wf_ref[...], preferred_element_type=jnp.float32)
    fg_ref[...] = jnp.maximum(zf + bf_ref[...], 0.0).astype(fg_ref.dtype)
    zs = jnp.dot(x, ws_ref[...], preferred_element_type=jnp.float32)
    sc_ref[...] = jnp.maximum(zs + bs_ref[...], 0.0).astype(sc_ref.dtype)


def _choose_tm(m_rows, cp, x_bytes, out_bytes, w_bytes,
               vmem_budget=28 << 20, tm_cap=2048):
    """Largest row tile (multiple of 8) fitting the VMEM budget.

    Budget: double-buffered x tile + two double-buffered output tiles + the
    two resident (double-buffered) weight halves.  Also keeps grid >= 2 when
    M allows it so the "parallel" axis can use both TensorCores on v7x.
    """
    fixed = 2 * 2 * (cp * cp + cp) * w_bytes
    per_row = 2 * cp * x_bytes + 2 * 2 * cp * out_bytes
    tm = (vmem_budget - fixed) // per_row
    tm = int(max(8, min(tm, tm_cap)))
    tm = (tm // 8) * 8
    if m_rows >= 16:
        two_way = _round_up(pl.cdiv(m_rows, 2), 8)   # >= 2 grid steps (v7x megacore)
    else:
        two_way = _round_up(m_rows, 8)
    tm = min(tm, two_way, _round_up(m_rows, 8))
    return max(8, tm)


def prepare_token_split_params(weight, bias, compute_dtype=jnp.bfloat16):
    """Precompute transposed (and lane-padded, if needed) weight/bias halves.

    Call once per set of weights; reuse the result for every forward call so
    the transpose / pad scatters never run on the hot path.
    """
    two_c, C = weight.shape
    assert two_c == 2 * C
    Cp = _round_up(max(C, 128), 128)

    w_t = weight.T.astype(compute_dtype)          # (C, 2C)
    b = bias.astype(jnp.float32)
    if Cp == C:
        wf, ws = w_t[:, :C], w_t[:, C:]
        bf, bs = b[:C].reshape(1, C), b[C:].reshape(1, C)
    else:
        # Fallback for C not a multiple of 128: pad each half to its own
        # lane-aligned (Cp, Cp) slab (zero lanes -> ReLU(0)=0, sliced off later).
        wf = jnp.zeros((Cp, Cp), compute_dtype).at[:C, :C].set(w_t[:, :C])
        ws = jnp.zeros((Cp, Cp), compute_dtype).at[:C, :C].set(w_t[:, C:])
        bf = jnp.zeros((1, Cp), jnp.float32).at[0, :C].set(b[:C])
        bs = jnp.zeros((1, Cp), jnp.float32).at[0, :C].set(b[C:])
    return wf, ws, bf, bs, C, Cp


def token_split_forward(x, params, out_dtype=None):
    """x: (N, B, C).  Returns (fg, scale), each (N, B, C)."""
    wf, ws, bf, bs, C, Cp = params
    N, B, Cx = x.shape
    assert Cx == C, f"channel mismatch: {Cx} vs {C}"
    M = N * B
    out_dtype = x.dtype if out_dtype is None else out_dtype

    x2d = x.reshape(M, C)                         # view, no HBM copy
    if Cp != C:
        # TODO(synk): for C not a multiple of 128 this pad copy is pure
        # overhead; a fused XLA Linear+ReLU+split is usually better there.
        x2d = jnp.zeros((M, Cp), x.dtype).at[:, :C].set(x2d)

    TM = _choose_tm(M, Cp,
                    jnp.dtype(x.dtype).itemsize,
                    jnp.dtype(out_dtype).itemsize,
                    jnp.dtype(wf.dtype).itemsize)
    grid_m = pl.cdiv(M, TM)                       # ragged last block is masked

    fg_p, sc_p = pl.pallas_call(
        _token_split_kernel,
        out_shape=(
            jax.ShapeDtypeStruct((M, Cp), out_dtype),
            jax.ShapeDtypeStruct((M, Cp), out_dtype),
        ),
        grid_spec=pltpu.PrefetchScalarGridSpec(
            num_scalar_prefetch=0,
            grid=(grid_m,),
            in_specs=[
                pl.BlockSpec((TM, Cp), lambda i: (i, 0)),    # x row tile
                pl.BlockSpec((Cp, Cp), lambda i: (0, 0)),    # resident W (fg half)
                pl.BlockSpec((Cp, Cp), lambda i: (0, 0)),    # resident W (scale half)
                pl.BlockSpec((1, Cp), lambda i: (0, 0)),     # bias fg half
                pl.BlockSpec((1, Cp), lambda i: (0, 0)),     # bias scale half
            ],
            out_specs=(
                pl.BlockSpec((TM, Cp), lambda i: (i, 0)),    # fg
                pl.BlockSpec((TM, Cp), lambda i: (i, 0)),    # scale
            ),
        ),
        compiler_params=pltpu.CompilerParams(
            dimension_semantics=("parallel",),
            vmem_limit_bytes=48 << 20),
    )(x2d, wf, ws, bf, bs)

    if Cp != C:
        fg_p = fg_p[:, :C]
        sc_p = sc_p[:, :C]
    return fg_p.reshape(N, B, C), sc_p.reshape(N, B, C)


if __name__ == "__main__":
    def run_case(N, B, C, seed=0):
        key = jax.random.PRNGKey(seed)
        kx, kw, kb = jax.random.split(key, 3)
        x = jax.random.normal(kx, (N, B, C), dtype=jnp.float32)
        # nn.Linear(embed_dim, embed_dim*2): weight (2C, C), bias (2C,)
        weight = jax.random.normal(kw, (2 * C, C), dtype=jnp.float32) * 0.05
        bias = jax.random.normal(kb, (2 * C,), dtype=jnp.float32) * 0.05

        params = prepare_token_split_params(weight, bias)      # once per weight
        fg, sc = token_split_forward(x, params)
        jax.block_until_ready((fg, sc))
        assert fg.shape == (N, B, C) and sc.shape == (N, B, C)

        # Reference with the same numerics (bf16-rounded operands, f32 accum).
        xb = x.astype(jnp.bfloat16).astype(jnp.float32)
        wb = weight.astype(jnp.bfloat16).astype(jnp.float32)
        z = jnp.einsum("nbc,dc->nbd", xb, wb,
                       precision=jax.lax.Precision.HIGHEST) + bias
        z = jnp.maximum(z, 0.0)
        assert jnp.allclose(fg, z[..., :C], atol=1e-3, rtol=1e-3)
        assert jnp.allclose(sc, z[..., C:], atol=1e-3, rtol=1e-3)

        # Full-f32 semantic sanity check (loose tolerance for the bf16 path).
        zf = jnp.einsum("nbc,dc->nbd", x, weight,
                        precision=jax.lax.Precision.HIGHEST) + bias
        zf = jnp.maximum(zf, 0.0)
        assert jnp.allclose(fg, zf[..., :C], atol=5e-2, rtol=5e-2)
        assert jnp.allclose(sc, zf[..., C:], atol=5e-2, rtol=5e-2)

    # Lane-aligned path (no padding), M=18 -> 2 row tiles with a ragged last one.
    run_case(N=9, B=2, C=128)
    # Small-C fallback path (lane padding to 128).
    run_case(N=8, B=2, C=32)

    print("KERNEL_OK")
</pallas_src>

<mosaic_0001>
module attributes {stable_mosaic.version = 11 : i64} {
  func.func @_token_split_kernel(%arg0: i32, %arg1: memref<16x128xf32, #tpu.memory_space<vmem>>, %arg2: memref<128x128xbf16, #tpu.memory_space<vmem>>, %arg3: memref<128x128xbf16, #tpu.memory_space<vmem>>, %arg4: memref<1x128xf32, #tpu.memory_space<vmem>>, %arg5: memref<1x128xf32, #tpu.memory_space<vmem>>, %arg6: memref<16x128xf32, #tpu.memory_space<vmem>>, %arg7: memref<16x128xf32, #tpu.memory_space<vmem>>) attributes {dimension_semantics = [#tpu.dimension_semantics<parallel>], iteration_bounds = array<i64: 2>, scalar_prefetch = 0 : i64, scratch_operands = 0 : i64, tpu.core_type = #tpu.core_type<tc>, window_params = [{transform_indices = @transform_0, window_bounds = array<i64: 16, 128>}, {pipeline_mode = #tpu.pipeline_mode<synchronous>, transform_indices = @transform_1, window_bounds = array<i64: 128, 128>}, {pipeline_mode = #tpu.pipeline_mode<synchronous>, transform_indices = @transform_2, window_bounds = array<i64: 128, 128>}, {pipeline_mode = #tpu.pipeline_mode<synchronous>, transform_indices = @transform_3, window_bounds = array<i64: 1, 128>}, {pipeline_mode = #tpu.pipeline_mode<synchronous>, transform_indices = @transform_4, window_bounds = array<i64: 1, 128>}, {transform_indices = @transform_5, window_bounds = array<i64: 16, 128>}, {transform_indices = @transform_6, window_bounds = array<i64: 16, 128>}]} {
    %c0 = arith.constant 0 : index
    %c0_0 = arith.constant 0 : index
    %0 = vector.load %arg1[%c0, %c0_0] : memref<16x128xf32, #tpu.memory_space<vmem>>, vector<16x128xf32>
    %1 = arith.truncf %0 : vector<16x128xf32> to vector<16x128xbf16>
    %c0_1 = arith.constant 0 : index
    %c0_2 = arith.constant 0 : index
    %2 = vector.load %arg2[%c0_1, %c0_2] : memref<128x128xbf16, #tpu.memory_space<vmem>>, vector<128x128xbf16>
    %cst = arith.constant dense<0.000000e+00> : vector<16x128xf32>
    %3 = tpu.matmul %1, %2, %cst {dimension_numbers = #tpu.dot_dimension_numbers<[1], [0], [0], [1], [0, 0, 1, 1], [], []>} : vector<16x128xbf16>, vector<128x128xbf16>, vector<16x128xf32> -> vector<16x128xf32>
    %c0_3 = arith.constant 0 : index
    %c0_4 = arith.constant 0 : index
    %4 = vector.load %arg4[%c0_3, %c0_4] : memref<1x128xf32, #tpu.memory_space<vmem>>, vector<1x128xf32>
    %5 = vector.broadcast %4 : vector<1x128xf32> to vector<16x128xf32>
    %6 = arith.addf %3, %5 : vector<16x128xf32>
    %cst_5 = arith.constant 0.000000e+00 : f32
    %7 = vector.broadcast %cst_5 : f32 to vector<16x128xf32>
    %8 = arith.maximumf %6, %7 : vector<16x128xf32>
    %c0_6 = arith.constant 0 : index
    %c0_7 = arith.constant 0 : index
    %9 = vector.load %arg6[%c0_6, %c0_7] : memref<16x128xf32, #tpu.memory_space<vmem>>, vector<16x128xf32>
    tpu.vector_store %arg6[%c0_6, %c0_7], %8 {strides = array<i32>} : memref<16x128xf32, #tpu.memory_space<vmem>>, vector<16x128xf32>,
    %c0_8 = arith.constant 0 : index
    %c0_9 = arith.constant 0 : index
    %10 = vector.load %arg3[%c0_8, %c0_9] : memref<128x128xbf16, #tpu.memory_space<vmem>>, vector<128x128xbf16>
    %cst_10 = arith.constant dense<0.000000e+00> : vector<16x128xf32>
    %11 = tpu.matmul %1, %10, %cst_10 {dimension_numbers = #tpu.dot_dimension_numbers<[1], [0], [0], [1], [0, 0, 1, 1], [], []>} : vector<16x128xbf16>, vector<128x128xbf16>, vector<16x128xf32> -> vector<16x128xf32>
    %c0_11 = arith.constant 0 : index
    %c0_12 = arith.constant 0 : index
    %12 = vector.load %arg5[%c0_11, %c0_12] : memref<1x128xf32, #tpu.memory_space<vmem>>, vector<1x128xf32>
    %13 = vector.broadcast %12 : vector<1x128xf32> to vector<16x128xf32>
    %14 = arith.addf %11, %13 : vector<16x128xf32>
    %cst_13 = arith.constant 0.000000e+00 : f32
    %15 = vector.broadcast %cst_13 : f32 to vector<16x128xf32>
    %16 = arith.maximumf %14, %15 : vector<16x128xf32>
    %c0_14 = arith.constant 0 : index
    %c0_15 = arith.constant 0 : index
    %17 = vector.load %arg7[%c0_14, %c0_15] : memref<16x128xf32, #tpu.memory_space<vmem>>, vector<16x128xf32>
    tpu.vector_store %arg7[%c0_14, %c0_15], %16 {strides = array<i32>} : memref<16x128xf32, #tpu.memory_space<vmem>>, vector<16x128xf32>,
    return
  }
  func.func @transform_0(%arg0: i32) -> (i32, i32) {
    %c0_i32 = arith.constant 0 : i32
    %c0_i32_0 = arith.constant 0 : i32
    return %arg0, %c0_i32 : i32, i32
  }
  func.func @transform_1(%arg0: i32) -> (i32, i32) {
    %c0_i32 = arith.constant 0 : i32
    %c0_i32_0 = arith.constant 0 : i32
    %c0_i32_1 = arith.constant 0 : i32
    return %c0_i32, %c0_i32_0 : i32, i32
  }
  func.func @transform_2(%arg0: i32) -> (i32, i32) {
    %c0_i32 = arith.constant 0 : i32
    %c0_i32_0 = arith.constant 0 : i32
    %c0_i32_1 = arith.constant 0 : i32
    return %c0_i32, %c0_i32_0 : i32, i32
  }
  func.func @transform_3(%arg0: i32) -> (i32, i32) {
    %c0_i32 = arith.constant 0 : i32
    %c0_i32_0 = arith.constant 0 : i32
    %c0_i32_1 = arith.constant 0 : i32
    return %c0_i32, %c0_i32_0 : i32, i32
  }
  func.func @transform_4(%arg0: i32) -> (i32, i32) {
    %c0_i32 = arith.constant 0 : i32
    %c0_i32_0 = arith.constant 0 : i32
    %c0_i32_1 = arith.constant 0 : i32
    return %c0_i32, %c0_i32_0 : i32, i32
  }
  func.func @transform_5(%arg0: i32) -> (i32, i32) {
    %c0_i32 = arith.constant 0 : i32
    %c0_i32_0 = arith.constant 0 : i32
    return %arg0, %c0_i32 : i32, i32
  }
  func.func @transform_6(%arg0: i32) -> (i32, i32) {
    %c0_i32 = arith.constant 0 : i32
    %c0_i32_0 = arith.constant 0 : i32
    return %arg0, %c0_i32 : i32, i32
  }
}

</mosaic_0001>

<bundles_post_ra>
// kernel: tpu_custom_call.1
= control target key start
LH: loop header
LB: loop body
LE: loop exit
PB: predicated region body
PF: predicated region fallthrough
CT: control target
= control target key end

     0   :  { %12 = vsyncpa [#allocation3], 0  ;;  %s1488_s0 = inlined_call_operand.hbm [shape: f32[18,128], index: 0, kind: input, shape index: {}]   ;;  %s1489_s1 = inlined_call_operand.hbm [shape: bf16[128,128], index: 1, kind: input, shape index: {}]   ;;  %s1490_s2 = inlined_call_operand.hbm [shape: bf16[128,128], index: 2, kind: input, shape index: {}]   ;;  %s1491_s3 = inlined_call_operand.vmem [shape: f32[1,128], index: 3, kind: input, shape index: {}]   ;;  %s1492_s4 = inlined_call_operand.vmem [shape: f32[1,128], index: 4, kind: input, shape index: {}]   ;;  %s1493_s5 = inlined_call_operand.hbm [shape: f32[18,128], index: 5, kind: output, shape index: {0}]   ;;  %s1494_s6 = inlined_call_operand.hbm [shape: f32[18,128], index: 6, kind: output, shape index: {1}]  }
   0x1   :  { %14 = vsyncpa [#allocation3 + $0x1], 0 }
   0x2   :  { %15 = vsyncpa [#allocation6], 0 }
   0x3   :  { %16 = vsyncpa [#allocation4], 0 }
   0x4   :  { %18 = vsyncpa [#allocation4 + $0x1], 0 }
   0x5   :  { %19 = vsyncpa [#allocation10], 0 }
   0x6   :  { %21 = vsyncpa [#allocation10 + $0x1], 0  ;;  %s1179_s21 = smov 0   ;;  %s1181_s22 = smov 0  }
   0x7   :  { %s1183_s23 = smov 0   ;;  %s1185_s24 = smov 0  }
   0x8 LB: > { %s1200_s25 = sadd.s32 4294967295, %s1127_s24   ;;  %s738_s26 = sadd.s32 4294967294, %s1127_s24   ;;  %s1127_s24 = sphi %s1185_s24, %s1516_s24   ;;  %s1123_s23 = sphi %s1183_s23, %s1520_s23   ;;  %s1119_s22 = sphi %s1181_s22, %s1519_s22   ;;  %s1115_s21 = sphi %s1179_s21, %s1518_s21  }
   0x9   : > { %s1204_s27 = sadd.s32 1, %s1127_s24   ;;  %s34_s28 = sadd.s32 1, %s1123_s23 }
   0xa   : > { %1500 = sst [smem:[#allocation15_spill]] %s1204_s27  ;;  %s31_s29 = ssub.s32 %s1127_s24, %s1204_s27 }
   0xb   : > { %p41_p0 = scmp.ne.s32.totalorder %s1123_s23, %s1119_s22  ;;  %p32_p1 = scmp.eq.s32.totalorder %s31_s29, 0 }
   0xc   : > { %p42_p2 = scmp.eq.s32.totalorder %s1127_s24, 0  ;;  %p47_p3 = scmp.ne.s32.totalorder %s1119_s22, %s1115_s21 }
   0xd   : > { %p1495_p4 = scmp.eq.s32.totalorder %s1200_s25, 0  ;;  %p155_p7 = scmp.eq.s32.totalorder %s1200_s25, 1 }
   0xe   : > { %s1216_s30 = scalar_select %p32_p1, %s1123_s23, %s34_s28  }
   0xf   : > { %p1218_p5 = por %p42_p2, %p41_p0  ;;  %p1224_p6 = por %p1495_p4, %p47_p3 }
  0x10   : > { %1501 = sst [smem:[#allocation16_spill]] %s1216_s30  ;;  %p161_p8 = scmp.eq.s32.totalorder %s738_s26, 1 }
  0x11   : > { %s1502_s7 = scalar_select %p1218_p5, 1, 0 }
  0x12   : > { %s1503_s8 = scalar_select %p1224_p6, 1, 0 }
  0x13   : > { %p739_p9 = scmp.ge.s32.totalorder %s1127_s24, 1  ;;  %p194_p10 = scmp.lt.s32.totalorder %s1127_s24, 3 }
  0x14   : > { %p1231_p11 = por %p155_p7, %p41_p0  ;;  %p1235_p12 = por %p161_p8, %p47_p3 }
  0x15   : > { %p1239_p13 = pnand %p739_p9, %p194_p10  ;;  %s1129_s12 = smov [#allocation5]  }
  0x16   : > { %s1504_s9 = scalar_select %p1231_p11, 1, 0 }
  0x17   : > { %s1505_s10 = scalar_select %p1235_p12, 1, 0 }
  0x18   : > { %s1506_s11 = scalar_select %p1239_p13, 1, 0 }
  0x19   : > { %p862_p1 = pneg %p1239_p13  ;;  %s206_s13 = sshll.u32 %s1129_s12, 4  ;;  %s207_s13 = int_to_ptr.vmem [resolvable:$true] %s206_s13 }
  0x1a   : > { %s1130_s15 = smov [#allocation7]   ;;  %s941_s19 = scalar_lea.hbm %s1489_s1, 1024 }
  0x1b   : > { %p1247_p2 = pnand %p862_p1, %p1495_p4  ;;  %s219_s16 = sshll.u32 %s1130_s15, 4  ;;  %s1251_s16 = int_to_ptr.vmem [resolvable:$true] %s219_s16 }
  0x1c   : > { %p942_p0 = scmp.ne.s32.totalorder %s1489_s1, %s941_s19  ;;  %p948_p9 = scmp.lt.u32.totalorder %s941_s19, %s1489_s1 }
  0x1d   : > { %p943_p3 = pneg %p1247_p2 }
  0x1f   : > { %p944_p7 = pnand %p943_p3, %p942_p0 }
  0x21   : > { %p945_p8 = pneg %p944_p7 }
  0x23   : > { %p950_p10 = pnand %p948_p9, %p945_p8 }
  0x25   : > { %953 = shalt.err (!%p950_p10)
}
  0x26   : > { %s954_s12 = scalar_lea.vmem %s207_s13, 1024  ;;  %p962_p11 = scmp.lt.s32.totalorder %s207_s13, %s207_s13 }
  0x27   : > { %p955_p1 = scmp.ne.s32.totalorder %s207_s13, %s954_s12  ;;  %p963_p6 = scmp.lt.s32.totalorder %s954_s12, %s954_s12 }
  0x29   : > { %p957_p4 = pnand %p955_p1, %p943_p3  ;;  %p964_p13 = por %p963_p6, %p962_p11 }
  0x2b   : > { %p958_p12 = pneg %p957_p4 }
  0x2d   : > { %p965_p5 = pnand %p964_p13, %p958_p12 }
  0x2f   : > { %968 = shalt.err (!%p965_p5)
}
  0x30   : > { %s1131_s15 = smov 64   ;;  %s1132_s17 = smov 4  }
  0x31   : > { %865 = dma.hbm_to_vmem [thread:$0]  (!%p1247_p2), %s1489_s1, 1024, %s207_s13, [#allocation6], %s1131_s15, %s1131_s15, %s1132_s17  }
  0x32   : > { %s969_s28 = scalar_lea.hbm %s1490_s2, 1024 }
  0x33   : > { %p970_p4 = scmp.ne.s32.totalorder %s1490_s2, %s969_s28  ;;  %p976_p11 = scmp.lt.u32.totalorder %s969_s28, %s1490_s2 }
  0x35   : > { %p972_p5 = pnand %p970_p4, %p943_p3 }
  0x37   : > { %p973_p6 = pneg %p972_p5 }
  0x39   : > { %p978_p12 = pnand %p976_p11, %p973_p6 }
  0x3b   : > { %981 = shalt.err (!%p978_p12)
}
  0x3c   : > { %s982_s13 = scalar_lea.vmem %s1251_s16, 1024  ;;  %p990_p8 = scmp.lt.s32.totalorder %s1251_s16, %s1251_s16 }
  0x3d   : > { %p983_p13 = scmp.ne.s32.totalorder %s1251_s16, %s982_s13  ;;  %p991_p9 = scmp.lt.s32.totalorder %s982_s13, %s982_s13 }
  0x3f   : > { %p985_p0 = pnand %p983_p13, %p943_p3  ;;  %p992_p10 = por %p991_p9, %p990_p8 }
  0x41   : > { %p986_p7 = pneg %p985_p0 }
  0x43   : > { %p993_p1 = pnand %p992_p10, %p986_p7 }
  0x45   : > { %996 = shalt.err (!%p993_p1)
}
  0x46   : > { %868 = dma.hbm_to_vmem [thread:$0]  (!%p1247_p2), %s1490_s2, 1024, %s1251_s16, [#allocation6], %s1131_s15, %s1131_s15, %s1132_s17  }
  0x47   : > { %p742_p4 = scmp.ge.s32.totalorder %s1127_s24, 2 }
  0x48   : > { %p1508_p3 = scmp.ne.s32.totalorder (!%p742_p4), %s1502_s7, 0 }
  0x49   : > { %235 = sbr.rel (%p742_p4) target bundleno = 115 (0x73), region = 32 }
  0x50   : > { %238 = sbr.rel (!%p1508_p3) target bundleno = 115 (0x73), region = 36  ;;  %s239_s18 = sand.u32 (%p1508_p3), 1, %s1123_s23  }
  0x51   : > { %s744_s19 = sshll.u32 (%p1508_p3), %s1127_s24, 1  ;;  %s743_s20 = sshll.u32 (%p1508_p3), %s239_s18, 4 }
  0x52   : > { %s245_s26 = ssub.s32 (%p1508_p3), 3, %s744_s19  ;;  %s1310_s15 = scalar_lea.sflag (%p1508_p3), [#allocation3], %s239_s18 }
  0x53   : > { %p246_p5 = scmp.lt.s32.totalorder (%p1508_p3), %s245_s26, 2  ;;  %s243_s17 = scalar_lea.vmem (%p1508_p3), [#allocation2], %s743_s20 }
  0x57   : > { %s1522_s26 = smov (!%p246_p5, %s245_s26), 2 }
  0x58   : > { %s1307_s14 = sshll.u32 %s1522_s26, 7 }
  0x59   : > { %s250_s16 = ssub.s32 256, %s1307_s14 }
  0x5a   : > { %251 = vsyncadd %s1310_s15, %s250_s16  ;;  %p746_p2 = scmp.ne.s32.totalorder %s1307_s14, 0  ;;  %s790_s7 = sshll.u32 %s1127_s24, 8 }
  0x5b   : > { %s1318_s12 = scalar_lea.hbm %s1488_s0, %s790_s7  ;;  %s256_s13 = sshll.u32 %s243_s17, 4  ;;  %s1320_s13 = int_to_ptr.vmem [resolvable:$true] %s256_s13 }
  0x5c   : > { %s997_s27 = scalar_lea.hbm %s1318_s12, %s1307_s14  ;;  %s1001_s19 = scalar_lea.hbm %s1488_s0, 384 }
  0x5d   : > { %p998_p6 = scmp.ne.s32.totalorder %s1318_s12, %s997_s27  ;;  %p1002_p13 = scmp.lt.u32.totalorder %s1318_s12, %s1488_s0 }
  0x5e   : > { %p1003_p0 = scmp.lt.u32.totalorder %s1001_s19, %s997_s27  ;;  %p1005_p8 = scmp.lt.u32.totalorder %s997_s27, %s1318_s12 }
  0x5f   : > { %p999_p11 = pnand %p998_p6, %p746_p2 }
  0x60   : > { %p1004_p7 = por %p1003_p0, %p1002_p13 }
  0x61   : > { %p1000_p12 = pneg %p999_p11 }
  0x62   : > { %p1006_p9 = por %p1005_p8, %p1004_p7 }
  0x64   : > { %p1007_p10 = pnand %p1006_p9, %p1000_p12 }
  0x66   : > { %1010 = shalt.err (!%p1007_p10)
}
  0x67   : > { %s1011_s16 = scalar_lea.vmem %s1320_s13, %s1307_s14  ;;  %s1133_s17 = smov [#allocation2]  }
  0x68   : > { %p1012_p1 = scmp.ne.s32.totalorder %s1320_s13, %s1011_s16  ;;  %s1015_s7 = sshll.u32 %s1133_s17, 4  ;;  %s1016_s7 = int_to_ptr.vmem [resolvable:$false] %s1015_s7 }
  0x69   : > { %s1017_s28 = scalar_lea.vmem %s1016_s7, 512  ;;  %p1018_p6 = scmp.lt.s32.totalorder %s1320_s13, %s1016_s7 }
  0x6a   : > { %p1013_p3 = pnand %p1012_p1, %p746_p2  ;;  %p1019_p11 = scmp.lt.s32.totalorder %s1017_s28, %s1011_s16 }
  0x6c   : > { %p1014_p5 = pneg %p1013_p3  ;;  %p1020_p13 = por %p1019_p11, %p1018_p6 }
  0x6e   : > { %p1021_p0 = pnand %p1020_p13, %p1014_p5 }
  0x70   : > { %1024 = shalt.err (!%p1021_p0)
}
  0x71   : > { %s1134_s29 = smov 128   ;;  %s1135_s27 = smov 8  }
  0x72   : > { %262 = dma.hbm_to_vmem [thread:$0]  (%p746_p2), %s1318_s12, %s1307_s14, %s1320_s13, %s1310_s15, %s1134_s29, %s1134_s29, %s1135_s27  }
  0x73 PF: > { %p1509_p12 = scmp.ne.s32.totalorder %s1506_s11, 0 }
  0x74   : > { %s1350_s30 = sand.u32 (!%p1509_p12), 1, %s1119_s22   ;;  %p1510_p7 = scmp.ne.s32.totalorder (!%p1509_p12), %s1503_s8, 0 }
  0x75   : > { %268 = sbr.rel (%p1509_p12) target bundleno = 446 (0x1be), region = 40  ;;  %s1353_s18 = sshll.u32 (!%p1509_p12), %s1350_s30, 4 }
  0x76   : > { %s271_s19 = scalar_lea.sflag (!%p1509_p12), [#allocation3], %s1350_s30  ;;  %s274_s20 = scalar_lea.vmem (!%p1509_p12), [#allocation2], %s1353_s18 }
  0x7c   : > { %1098 = dma.done.wait (%p1510_p7), %s271_s19, 256  }
  0x7d   : > { %1100 = vsyncadd (%p1510_p7), %s271_s19, 4294967040  ;;  %p1511_p2 = scmp.eq.s32.totalorder %s1200_s25, 0 }
  0x7f   : > { %1102 = dma.done.wait (%p1511_p2), [#allocation6], 2048   ;;  %p1512_p8 = pmov %p1511_p2 }
  0x80   : > { %v1136_v0 = vmov 0.0   ;;  %vm1137_vm0 = vmmov 0   ;;  %v925_v1 = vld [vmem:[#allocation5] sm:$0xff]   ;;  %v927_v3 = vld [vmem:[#allocation5 + $0x8] sm:$0xff]   ;;  %v929_v5 = vld [vmem:[#allocation5 + $0x10] sm:$0xff]   ;;  %s308_s12 = scalar_lea.vmem [#allocation8], %s1353_s18 }
  0x81   : > { %1104 = vsyncadd (%p1512_p8), [#allocation6], 4294965248  ;;  %811 = vmatprep.subr.bf16.mxu0 %v1136_v0  ;;  %831 = vmatprep.subr.bf16.mxu1 %v1136_v0  ;;  %v926_v2 = vld [vmem:[#allocation7] sm:$0xff]   ;;  %v928_v4 = vld [vmem:[#allocation7 + $0x8] sm:$0xff]   ;;  %s1377_s13 = scalar_lea.vmem [#allocation9], %s1353_s18  ;;  %s568_s26 = scalar_lea.sflag [#allocation4], %s1350_s30 }
  0x82   : > { %827 = vmatprep.mubr.msk.bf16.mxu0 %vm1137_vm0, %v1136_v0  ;;  %847 = vmatprep.mubr.msk.bf16.mxu1 %vm1137_vm0, %v1136_v0  ;;  %v930_v6 = vld [vmem:[#allocation7 + $0x10] sm:$0xff]   ;;  %v931_v7 = vld [vmem:[#allocation5 + $0x18] sm:$0xff]   ;;  %v933_v9 = vld [vmem:[#allocation5 + $0x20] sm:$0xff]   ;;  %s573_s16 = scalar_lea.sflag [#allocation10], %s1350_s30  ;;  %p1513_p9 = scmp.ne.s32.totalorder %s1504_s9, 0 }
  0x83   : > { %812 = vmatpush3.bf16.msra.mxu0 %v925_v1  ;;  %832 = vmatpush3.bf16.msra.mxu1 %v926_v2  ;;  %v932_v8 = vld [vmem:[#allocation7 + $0x18] sm:$0xff]   ;;  %v934_v10 = vld [vmem:[#allocation7 + $0x20] sm:$0xff]   ;;  %v935_v11 = vld [vmem:[#allocation5 + $0x28] sm:$0xff]   ;;  %s776_s17 = sshll.u32 (%p1513_p9), %s1200_s25, 1 }
  0x84   : > { %813 = vmatprep.subr.bf16.mxu0 %v1136_v0  ;;  %833 = vmatprep.subr.bf16.mxu1 %v1136_v0  ;;  %v936_v12 = vld [vmem:[#allocation7 + $0x28] sm:$0xff]   ;;  %v937_v13 = vld [vmem:[#allocation5 + $0x30] sm:$0xff]   ;;  %v939_v15 = vld [vmem:[#allocation5 + $0x38] sm:$0xff]   ;;  %s581_s7 = ssub.s32 (%p1513_p9), 3, %s776_s17 }
  0x85   : > { %v938_v14 = vld [vmem:[#allocation7 + $0x30] sm:$0xff]   ;;  %v333_v17 = vld [vmem:[%s274_s20 + $0x8] sm:$0xff]  ;;  %v756_v20 = vld [vmem:[%s1491_s3] ss:$0 sm:$0xff]  ;;  %p582_p10 = scmp.lt.s32.totalorder (%p1513_p9), %s581_s7, 2 }
  0x86   : > { %v332_v16 = vld [vmem:[%s274_s20] sm:$0xff]  ;;  %v940_v18 = vld [vmem:[#allocation7 + $0x38] sm:$0xff]  }
  0x87   : > { %814 = vmatpush3.bf16.msra.mxu0 %v927_v3  ;;  %834 = vmatpush3.bf16.msra.mxu1 %v928_v4  ;;  %v334_v19 = vpack.c.bf16 %v333_v17, %v332_v16  ;;  %v765_v21 = vld [vmem:[%s1492_s4] ss:$0 sm:$0xff] }
  0x88   : > { %815 = vmatprep.subr.bf16.mxu0 %v1136_v0  ;;  %835 = vmatprep.subr.bf16.mxu1 %v1136_v0 }
  0x8b   : > { %816 = vmatpush3.bf16.msra.mxu0 %v929_v5  ;;  %836 = vmatpush3.bf16.msra.mxu1 %v930_v6 }
  0x8c   : > { %817 = vmatprep.subr.bf16.mxu0 %v1136_v0  ;;  %837 = vmatprep.subr.bf16.mxu1 %v1136_v0 }
  0x8f   : > { %818 = vmatpush3.bf16.msra.mxu0 %v931_v7  ;;  %838 = vmatpush3.bf16.msra.mxu1 %v932_v8 }
  0x90   : > { %819 = vmatprep.subr.bf16.mxu0 %v1136_v0  ;;  %839 = vmatprep.subr.bf16.mxu1 %v1136_v0 }
  0x93   : > { %820 = vmatpush3.bf16.msra.mxu0 %v933_v9  ;;  %840 = vmatpush3.bf16.msra.mxu1 %v934_v10 }
  0x94   : > { %821 = vmatprep.subr.bf16.mxu0 %v1136_v0  ;;  %841 = vmatprep.subr.bf16.mxu1 %v1136_v0 }
  0x97   : > { %822 = vmatpush3.bf16.msra.mxu0 %v935_v11  ;;  %842 = vmatpush3.bf16.msra.mxu1 %v936_v12 }
  0x98   : > { %823 = vmatprep.subr.bf16.mxu0 %v1136_v0  ;;  %843 = vmatprep.subr.bf16.mxu1 %v1136_v0 }
  0x9b   : > { %824 = vmatpush3.bf16.msra.mxu0 %v937_v13  ;;  %844 = vmatpush3.bf16.msra.mxu1 %v938_v14 }
  0x9c   : > { %825 = vmatprep.subr.bf16.mxu0 %v1136_v0  ;;  %845 = vmatprep.subr.bf16.mxu1 %v1136_v0 }
  0x9f   : > { %826 = vmatpush3.bf16.msra.mxu0 %v939_v15  ;;  %846 = vmatpush3.bf16.msra.mxu1 %v940_v18 }
  0xa2   : > { %828 = vmatmul.mubr.bf16.vlgmr.msra.gmra.mrb[0].mxu0 %v334_v19  ;;  %848 = vmatmul.mubr.bf16.vlgmr.msra.gmra.mrb[0].mxu1 %v334_v19 }
 0x175   : > { %v440_v22 = vpop.f32.mrb[0].mxu0  ;;  %v556_v24 = vpop.f32.mrb[0].mxu1 }
 0x176   : > { %v441_v23 = vadd.f32 %v756_v20, %v440_v22  ;;  %v829_v25 = vpop.f32.mrb[1].mxu0  ;;  %v557_v26 = vadd.f32 %v765_v21, %v556_v24  ;;  %v849_v27 = vpop.f32.mrb[1].mxu1  ;;  %579 = sbr.rel (!%p1513_p9) target bundleno = 409 (0x199), region = 56 }
 0x177   : > { %v443_v28 = vpop.f32.mrb[2].mxu0  ;;  %v559_v31 = vpop.f32.mrb[2].mxu1 }
 0x178   : > { %v447_v29 = vmax.f32 %v441_v23, 0.0  ;;  %v444_v30 = vadd.f32 %v756_v20, %v443_v28  ;;  %v830_v32 = vpop.f32.mrb[3].mxu0  ;;  %v563_v33 = vmax.f32 %v557_v26, 0.0  ;;  %v560_v34 = vadd.f32 %v765_v21, %v559_v31  ;;  %v850_v35 = vpop.f32.mrb[3].mxu1 }
 0x17a   : > { %449 = vst [vmem:[%s308_s12] sm:$0xff] %v447_v29  ;;  %v448_v36 = vmax.f32 %v444_v30, 0.0  ;;  %565 = vst [vmem:[%s1377_s13] sm:$0xff] %v563_v33  ;;  %v564_v37 = vmax.f32 %v560_v34, 0.0 }
 0x17c   : > { %450 = vst [vmem:[%s308_s12 + $0x8] sm:$0xff] %v448_v36  ;;  %566 = vst [vmem:[%s1377_s13 + $0x8] sm:$0xff] %v564_v37 }
 0x17d   : > { %s1524_s7 = smov (!%p582_p10, %s581_s7), 2 }
 0x17e   : > { %s1386_s28 = sshll.u32 %s1524_s7, 7 }
 0x17f   : > { %s586_s29 = ssub.s32 256, %s1386_s28 }
 0x180   : > { %587 = vsyncadd %s568_s26, %s586_s29  ;;  %p778_p1 = scmp.ne.s32.totalorder %s1386_s28, 0  ;;  %s791_s27 = sshll.u32 %s1200_s25, 8 }
 0x181   : > { %s1396_s20 = scalar_lea.hbm %s1493_s5, %s791_s27  ;;  %s592_s8 = sshll.u32 %s308_s12, 4  ;;  %s1398_s8 = int_to_ptr.vmem [resolvable:$true] %s592_s8 }
 0x182   : > { %s1025_s11 = scalar_lea.vmem %s1398_s8, %s1386_s28  ;;  %s1138_s14 = smov [#allocation8]  }
 0x183   : > { %p1026_p3 = scmp.ne.s32.totalorder %s1398_s8, %s1025_s11  ;;  %s1029_s15 = sshll.u32 %s1138_s14, 4  ;;  %s1030_s15 = int_to_ptr.vmem [resolvable:$false] %s1029_s15 }
 0x184   : > { %s1031_s17 = scalar_lea.vmem %s1030_s15, 512  ;;  %p1032_p11 = scmp.lt.s32.totalorder %s1398_s8, %s1030_s15 }
 0x185   : > { %p1027_p5 = pnand %p1026_p3, %p778_p1  ;;  %p1033_p13 = scmp.lt.s32.totalorder %s1031_s17, %s1025_s11 }
 0x187   : > { %p1028_p6 = pneg %p1027_p5  ;;  %p1034_p0 = por %p1033_p13, %p1032_p11 }
 0x189   : > { %p1035_p12 = pnand %p1034_p0, %p1028_p6 }
 0x18b   : > { %1038 = shalt.err (!%p1035_p12)
}
 0x18c   : > { %s1039_s12 = scalar_lea.hbm %s1396_s20, %s1386_s28  ;;  %s1043_s27 = scalar_lea.hbm %s1493_s5, 384 }
 0x18d   : > { %p1040_p7 = scmp.ne.s32.totalorder %s1396_s20, %s1039_s12  ;;  %p1044_p9 = scmp.lt.u32.totalorder %s1396_s20, %s1493_s5 }
 0x18e   : > { %p1045_p10 = scmp.lt.u32.totalorder %s1043_s27, %s1039_s12  ;;  %p1047_p5 = scmp.lt.u32.totalorder %s1039_s12, %s1396_s20 }
 0x18f   : > { %p1041_p2 = pnand %p1040_p7, %p778_p1 }
 0x190   : > { %p1046_p3 = por %p1045_p10, %p1044_p9 }
 0x191   : > { %p1042_p8 = pneg %p1041_p2 }
 0x192   : > { %p1048_p6 = por %p1047_p5, %p1046_p3 }
 0x194   : > { %p1049_p11 = pnand %p1048_p6, %p1042_p8 }
 0x196   : > { %1052 = shalt.err (!%p1049_p11)
}
 0x197   : > { %s1139_s11 = smov 128   ;;  %s1140_s14 = smov 8  }
 0x198   : > { %598 = dma.vmem_to_hbm [thread:$0]  (%p778_p1), %s1398_s8, %s1386_s28, %s1396_s20, %s568_s26, %s1139_s11, %s1139_s11, %s1140_s14  }
 0x199 PF: > { %p1514_p13 = scmp.ne.s32.totalorder %s1504_s9, 0 }
 0x19a   : > { %s782_s15 = sshll.u32 (%p1514_p13), %s1200_s25, 1 }
 0x19b   : > { %601 = sbr.rel (!%p1514_p13) target bundleno = 446 (0x1be), region = 60  ;;  %s603_s17 = ssub.s32 (%p1514_p13), 3, %s782_s15 }
 0x19c   : > { %p604_p0 = scmp.lt.s32.totalorder (%p1514_p13), %s603_s17, 2 }
 0x1a2   : > { %s1526_s17 = smov (!%p604_p0, %s603_s17), 2 }
 0x1a3   : > { %s1429_s12 = sshll.u32 %s1526_s17, 7 }
 0x1a4   : > { %s608_s7 = ssub.s32 256, %s1429_s12 }
 0x1a5   : > { %609 = vsyncadd %s573_s16, %s608_s7  ;;  %p784_p1 = scmp.ne.s32.totalorder %s1429_s12, 0  ;;  %s792_s9 = sshll.u32 %s1200_s25, 8 }
 0x1a6   : > { %s1439_s20 = scalar_lea.hbm %s1494_s6, %s792_s9  ;;  %s614_s8 = sshll.u32 %s1377_s13, 4  ;;  %s1442_s8 = int_to_ptr.vmem [resolvable:$true] %s614_s8 }
 0x1a7   : > { %s1053_s29 = scalar_lea.vmem %s1442_s8, %s1429_s12  ;;  %s1141_s27 = smov [#allocation9]  }
 0x1a8   : > { %p1054_p12 = scmp.ne.s32.totalorder %s1442_s8, %s1053_s29  ;;  %s1057_s18 = sshll.u32 %s1141_s27, 4  ;;  %s1058_s18 = int_to_ptr.vmem [resolvable:$false] %s1057_s18 }
 0x1a9   : > { %s1059_s25 = scalar_lea.vmem %s1058_s18, 512  ;;  %p1060_p8 = scmp.lt.s32.totalorder %s1442_s8, %s1058_s18 }
 0x1aa   : > { %p1055_p7 = pnand %p1054_p12, %p784_p1  ;;  %p1061_p9 = scmp.lt.s32.totalorder %s1059_s25, %s1053_s29 }
 0x1ac   : > { %p1056_p2 = pneg %p1055_p7  ;;  %p1062_p10 = por %p1061_p9, %p1060_p8 }
 0x1ae   : > { %p1063_p3 = pnand %p1062_p10, %p1056_p2 }
 0x1b0   : > { %1066 = shalt.err (!%p1063_p3)
}
 0x1b1   : > { %s1067_s13 = scalar_lea.hbm %s1439_s20, %s1429_s12  ;;  %s1071_s14 = scalar_lea.hbm %s1494_s6, 384 }
 0x1b2   : > { %p1068_p5 = scmp.ne.s32.totalorder %s1439_s20, %s1067_s13  ;;  %p1072_p13 = scmp.lt.u32.totalorder %s1439_s20, %s1494_s6 }
 0x1b3   : > { %p1073_p0 = scmp.lt.u32.totalorder %s1071_s14, %s1067_s13  ;;  %p1075_p7 = scmp.lt.u32.totalorder %s1067_s13, %s1439_s20 }
 0x1b4   : > { %p1069_p6 = pnand %p1068_p5, %p784_p1 }
 0x1b5   : > { %p1074_p12 = por %p1073_p0, %p1072_p13 }
 0x1b6   : > { %p1070_p11 = pneg %p1069_p6 }
 0x1b7   : > { %p1076_p2 = por %p1075_p7, %p1074_p12 }
 0x1b9   : > { %p1077_p8 = pnand %p1076_p2, %p1070_p11 }
 0x1bb   : > { %1080 = shalt.err (!%p1077_p8)
}
 0x1bc   : > { %s1142_s7 = smov 128   ;;  %s1143_s9 = smov 8  }
 0x1bd   : > { %620 = dma.vmem_to_hbm [thread:$0]  (%p784_p1), %s1442_s8, %s1429_s12, %s1439_s20, %s573_s16, %s1142_s7, %s1142_s7, %s1143_s9  }
 0x1be PF: > { %s629_s26 = sand.u32 1, %s1115_s21   ;;  %p1515_p9 = scmp.ne.s32.totalorder %s1505_s10, 0 }
 0x1bf   : > { %s630_s28 = scalar_lea.sflag [#allocation4], %s629_s26 }
 0x1c0   : > { %p870_p10 = pnand %p742_p4, %p1515_p9 }
 0x1c2   : > { %1106 = dma.done.wait (!%p870_p10), %s630_s28, 256  }
 0x1c3   : > { %1108 = vsyncadd (!%p870_p10), %s630_s28, 4294967040  ;;  %s639_s29 = scalar_lea.sflag [#allocation10], %s629_s26 }
 0x1c4   : > { %1110 = dma.done.wait (!%p870_p10), %s639_s29, 256  }
 0x1c5   : > { %1112 = vsyncadd (!%p870_p10), %s639_s29, 4294967040  ;;  %s1516_s24 = sld [smem:[#allocation15_spill]]  ;;  %s1517_s30 = sld [smem:[#allocation16_spill]] }
 0x1c6   : > { %s1518_s21 = smov %s1119_s22  ;;  %s1519_s22 = smov %s1123_s23 }
 0x1cb   : > { %p24_p1 = scmp.ge.s32.totalorder %s1516_s24, 4   ;;  %s1520_s23 = smov %s1517_s30 }
 0x1cd   :  { %26 = sbr.rel (!%p24_p1) target bundleno = 8 (0x8), region = 110 }
 0x1d4   :  { %644 = vsyncpa [#allocation3], 1 }
 0x1d5   :  { %646 = vsyncpa [#allocation3 + $0x1], 1 }
 0x1d6   :  { %647 = vsyncpa [#allocation6], 1 }
 0x1d7   :  { %648 = vsyncpa [#allocation4], 1 }
 0x1d8   :  { %650 = vsyncpa [#allocation4 + $0x1], 1 }
 0x1d9   :  { %651 = vsyncpa [#allocation10], 1 }
 0x1da   :  { %653 = vsyncpa [#allocation10 + $0x1], 1 }

</bundles_post_ra>
